<compile_context>
chip_gen: v6e
topology: v6e:2x2x1
jax: 0.10.0
libtpu: 0.0.40
codegen_flags: <defaults>
</compile_context>

<pallas_src>
import jax
import jax.numpy as jnp
from jax.experimental import pallas as pl
from jax.experimental.pallas import tpu as pltpu


# ----------------------------------------------------------------------------- geometry
def _stage_geometry(C0, T0, params):
    stages = []
    Cin, T = C0, T0
    for (w, _b, _g, _be) in params:
        Cout, wCin, K = w.shape
        assert wCin == Cin
        T_conv = T + 2 - K + 1            # Conv1d(padding=1, stride=1)
        T_pool = (T_conv - 1) // 2 + 1    # MaxPool1d(kernel=3, stride=2, padding=1)
        stages.append(dict(Cin=Cin, Cout=Cout, K=K, T_in=T, T_conv=T_conv, T_pool=T_pool))
        Cin, T = Cout, T_pool
    return stages


# ----------------------------------------------------------------------------- kernel
def make_downsample_kernel(N, stages, eps=1e-5):
    """Fused kernel: for each stage, Conv1d(pad=1) + ReLU + BatchNorm1d + MaxPool1d(3,2,1)."""
    S = len(stages)

    def kernel(*refs):
        # refs: x, (w0, p0), (w1, p1), ..., out0, out1, ..., zscratch0, zscratch1, ...
        x_ref = refs[0]
        w_refs = [refs[1 + 2 * i] for i in range(S)]          # (K*Cin, Cout)
        p_refs = [refs[2 + 2 * i] for i in range(S)]          # (3, Cout): bias, gamma, beta
        out_refs = list(refs[1 + 2 * S:1 + 3 * S])            # (N*T_pool, Cout)
        z_refs = list(refs[1 + 3 * S:])                       # (N*(2*T_pool+1), Cout)

        # Stage-0 input: (N*(T0+2), Cin0), zero-padded in time per batch by the wrapper.
        Tp0 = stages[0]['T_in'] + 2
        xall = x_ref[...]
        cur = [xall[n * Tp0:(n + 1) * Tp0, :] for n in range(N)]   # per-batch (T_in+2, Cin)

        for i, st in enumerate(stages):
            Cin, Cout, K = st['Cin'], st['Cout'], st['K']
            T_conv, T_pool = st['T_conv'], st['T_pool']

            if i > 0:
                # zero-pad time (pad=1) per batch for this stage's conv
                zrow = jnp.zeros((1, Cin), jnp.float32)
                cur = [jnp.concatenate([zrow, c, zrow], axis=0) for c in cur]

            # ---- im2col-lite: K shifted views concatenated on the channel (lane) axis ----
            rows = []
            for n in range(N):
                taps = [cur[n][k:k + T_conv, :] for k in range(K)]          # each (T_conv, Cin)
                rows.append(jnp.concatenate(taps, axis=1))                  # (T_conv, K*Cin)
            xcat = jnp.concatenate(rows, axis=0) if N > 1 else rows[0]      # (N*T_conv, K*Cin)

            w = w_refs[i][...]                                              # (K*Cin, Cout)
            bias = p_refs[i][0:1, :]
            gamma = p_refs[i][1:2, :]
            beta = p_refs[i][2:3, :]

            # ---- Conv1d as ONE MXU matmul (contraction depth K*Cin), bias, ReLU ----
            y = jnp.dot(xcat, w, preferred_element_type=jnp.float32) + bias  # (N*T_conv, Cout)
            y = jnp.maximum(y, 0.0)

            # ---- BatchNorm1d: batch stats in one sweep, folded into scale/shift ----
            mean = jnp.mean(y, axis=0, keepdims=True)                        # (1, Cout)
            meansq = jnp.mean(y * y, axis=0, keepdims=True)
            var = meansq - mean * mean                                       # biased variance
            scale = gamma * jax.lax.rsqrt(var + eps)
            shift = beta - mean * scale
            y = y * scale + shift                                            # (N*T_conv, Cout)

            # ---- MaxPool1d(kernel=3, stride=2, padding=1) via -inf scratch + strided slices
            # out[t'] = max(z[2t'], z[2t'+1], z[2t'+2]) with z = [-inf, y_0..y_{Tc-1}, -inf...]
            L = 2 * T_pool + 1
            z = z_refs[i]
            z[...] = jnp.full(z.shape, -jnp.inf, dtype=z.dtype)
            for n in range(N):
                z[n * L + 1:n * L + 1 + T_conv, :] = y[n * T_conv:(n + 1) * T_conv, :]

            nxt = []
            for n in range(N):
                s0 = z[pl.ds(n * L + 0, T_pool, stride=2), :]
                s1 = z[pl.ds(n * L + 1, T_pool, stride=2), :]
                s2 = z[pl.ds(n * L + 2, T_pool, stride=2), :]
                p = jnp.maximum(jnp.maximum(s0, s1), s2)                     # (T_pool, Cout)
                out_refs[i][n * T_pool:(n + 1) * T_pool, :] = p
                nxt.append(p)                                                # stays in VMEM
            cur = nxt

    return kernel


# ----------------------------------------------------------------------------- wrapper
def downsample_forward(x_nct, params, eps=1e-5):
    """Mirrors DownSample.forward: returns [input, stage0_out, stage1_out, ...] in NCL."""
    N, C0, T0 = x_nct.shape
    stages = _stage_geometry(C0, T0, params)
    S = len(stages)

    # Layout plumbing outside the kernel: NCL -> NLC, zero-pad time, flatten batch*time
    # (the flatten is a no-op view in HBM).
    x_nlc = jnp.transpose(x_nct, (0, 2, 1))                     # (N, T0, C0)
    x_pad = jnp.pad(x_nlc, ((0, 0), (1, 1), (0, 0)))            # (N, T0+2, C0)
    x_flat = x_pad.reshape(N * (T0 + 2), C0)

    kernel_inputs = [x_flat]
    for st, (w, b, g, be) in zip(stages, params):
        K, Cin, Cout = st['K'], st['Cin'], st['Cout']
        # (Cout, Cin, K) -> (K, Cin, Cout) -> (K*Cin, Cout): row k*Cin+cin matches the
        # in-kernel lane concatenation order of the shifted views.
        w_flat = jnp.transpose(w, (2, 1, 0)).reshape(K * Cin, Cout)
        p = jnp.stack([b, g, be], axis=0)                       # (3, Cout): one DMA, not three
        kernel_inputs += [w_flat, p]

    vmem = pl.BlockSpec(memory_space=pltpu.MemorySpace.VMEM)
    out_shape = tuple(jax.ShapeDtypeStruct((N * st['T_pool'], st['Cout']), jnp.float32)
                      for st in stages)
    scratch = [pltpu.VMEM((N * (2 * st['T_pool'] + 1), st['Cout']), jnp.float32)
               for st in stages]

    outs = pl.pallas_call(
        make_downsample_kernel(N, stages, eps),
        out_shape=out_shape,
        in_specs=[vmem] * len(kernel_inputs),
        out_specs=tuple([vmem] * S),
        scratch_shapes=scratch,
    )(*kernel_inputs)

    feature_list = [x_nct]
    for st, o in zip(stages, outs):
        o_nlc = o.reshape(N, st['T_pool'], st['Cout'])
        feature_list.append(jnp.transpose(o_nlc, (0, 2, 1)))    # back to PyTorch NCL
    return feature_list


# ----------------------------------------------------------------------------- reference
def ref_layer(x, w, b, gamma, beta, eps=1e-5):
    y = jax.lax.conv_general_dilated(
        x, w, window_strides=(1,), padding=((1, 1),),
        dimension_numbers=('NCH', 'OIH', 'NCH'))
    y = y + b[None, :, None]
    y = jnp.maximum(y, 0.0)
    mean = jnp.mean(y, axis=(0, 2), keepdims=True)
    var = jnp.mean((y - mean) ** 2, axis=(0, 2), keepdims=True)
    y = (y - mean) / jnp.sqrt(var + eps) * gamma[None, :, None] + beta[None, :, None]
    y = jax.lax.reduce_window(y, -jnp.inf, jax.lax.max,
                              (1, 1, 3), (1, 1, 2), ((0, 0), (0, 0), (1, 1)))
    return y


# ----------------------------------------------------------------------------- main
if __name__ == "__main__":
    # config: feature_dim=32, down_sample: dims=[32, 64], kernel_size=[3, 3]
    feature_dim = 32
    dims = [32, 64]
    kernel_sizes = [3, 3]
    N, T = 2, 16

    key = jax.random.PRNGKey(0)
    key, kx = jax.random.split(key)
    x = jax.random.normal(kx, (N, feature_dim, T), dtype=jnp.float32)

    params = []
    in_dim = feature_dim
    for out_dim, ks in zip(dims, kernel_sizes):
        key, kw, kb = jax.random.split(key, 3)
        fan_in = in_dim * ks
        bound = 1.0 / (fan_in ** 0.5)
        w = jax.random.uniform(kw, (out_dim, in_dim, ks), jnp.float32, -bound, bound)
        b = jax.random.uniform(kb, (out_dim,), jnp.float32, -bound, bound)
        gamma = jnp.ones((out_dim,), jnp.float32)   # BatchNorm1d default affine init
        beta = jnp.zeros((out_dim,), jnp.float32)
        params.append((w, b, gamma, beta))
        in_dim = out_dim

    feats = downsample_forward(x, params)
    feats = [jax.block_until_ready(f) for f in feats]

    # pure-JAX reference check
    xr = x
    refs = [xr]
    for (w, b, gamma, beta) in params:
        xr = ref_layer(xr, w, b, gamma, beta)
        refs.append(xr)
    for got, want in zip(feats, refs):
        assert got.shape == want.shape, (got.shape, want.shape)
        assert jnp.allclose(got, want, atol=1e-4, rtol=1e-4), \
            float(jnp.max(jnp.abs(got - want)))

    print("KERNEL_OK")
</pallas_src>

<mosaic_0001>
module attributes {stable_mosaic.version = 11 : i64} {
  func.func @kernel(%arg0: memref<36x32xf32, #tpu.memory_space<vmem>>, %arg1: memref<96x32xf32, #tpu.memory_space<vmem>>, %arg2: memref<3x32xf32, #tpu.memory_space<vmem>>, %arg3: memref<96x64xf32, #tpu.memory_space<vmem>>, %arg4: memref<3x64xf32, #tpu.memory_space<vmem>>, %arg5: memref<16x32xf32, #tpu.memory_space<vmem>>, %arg6: memref<8x64xf32, #tpu.memory_space<vmem>>, %arg7: memref<34x32xf32, #tpu.memory_space<vmem>>, %arg8: memref<18x64xf32, #tpu.memory_space<vmem>>) attributes {dimension_semantics = [], scalar_prefetch = 0 : i64, scratch_operands = 2 : i64, tpu.core_type = #tpu.core_type<tc>} {
    %c0 = arith.constant 0 : index
    %c0_0 = arith.constant 0 : index
    %0 = vector.load %arg0[%c0, %c0_0] : memref<36x32xf32, #tpu.memory_space<vmem>>, vector<36x32xf32>
    %1 = vector.extract_strided_slice %0 {offsets = [0, 0], sizes = [18, 32], strides = [1, 1]} : vector<36x32xf32> to vector<18x32xf32>
    %2 = vector.extract_strided_slice %0 {offsets = [18, 0], sizes = [18, 32], strides = [1, 1]} : vector<36x32xf32> to vector<18x32xf32>
    %3 = vector.extract_strided_slice %1 {offsets = [0, 0], sizes = [16, 32], strides = [1, 1]} : vector<18x32xf32> to vector<16x32xf32>
    %4 = vector.extract_strided_slice %1 {offsets = [1, 0], sizes = [16, 32], strides = [1, 1]} : vector<18x32xf32> to vector<16x32xf32>
    %5 = vector.extract_strided_slice %1 {offsets = [2, 0], sizes = [16, 32], strides = [1, 1]} : vector<18x32xf32> to vector<16x32xf32>
    %6 = tpu.concatenate %3, %4, %5 in 1 : vector<16x32xf32>, vector<16x32xf32>, vector<16x32xf32> -> vector<16x96xf32>
    %7 = vector.extract_strided_slice %2 {offsets = [0, 0], sizes = [16, 32], strides = [1, 1]} : vector<18x32xf32> to vector<16x32xf32>
    %8 = vector.extract_strided_slice %2 {offsets = [1, 0], sizes = [16, 32], strides = [1, 1]} : vector<18x32xf32> to vector<16x32xf32>
    %9 = vector.extract_strided_slice %2 {offsets = [2, 0], sizes = [16, 32], strides = [1, 1]} : vector<18x32xf32> to vector<16x32xf32>
    %10 = tpu.concatenate %7, %8, %9 in 1 : vector<16x32xf32>, vector<16x32xf32>, vector<16x32xf32> -> vector<16x96xf32>
    %11 = tpu.concatenate %6, %10 in 0 : vector<16x96xf32>, vector<16x96xf32> -> vector<32x96xf32>
    %c0_1 = arith.constant 0 : index
    %c0_2 = arith.constant 0 : index
    %12 = vector.load %arg1[%c0_1, %c0_2] : memref<96x32xf32, #tpu.memory_space<vmem>>, vector<96x32xf32>
    %c0_3 = arith.constant 0 : index
    %c0_4 = arith.constant 0 : index
    %13 = vector.load %arg2[%c0_3, %c0_4] : memref<3x32xf32, #tpu.memory_space<vmem>>, vector<1x32xf32>
    %c1 = arith.constant 1 : index
    %c0_5 = arith.constant 0 : index
    %14 = vector.load %arg2[%c1, %c0_5] : memref<3x32xf32, #tpu.memory_space<vmem>>, vector<1x32xf32>
    %c2 = arith.constant 2 : index
    %c0_6 = arith.constant 0 : index
    %15 = vector.load %arg2[%c2, %c0_6] : memref<3x32xf32, #tpu.memory_space<vmem>>, vector<1x32xf32>
    %cst = arith.constant dense<0.000000e+00> : vector<32x32xf32>
    %16 = tpu.matmul %11, %12, %cst {dimension_numbers = #tpu.dot_dimension_numbers<[1], [0], [0], [1], [0, 0, 1, 1], [], []>} : vector<32x96xf32>, vector<96x32xf32>, vector<32x32xf32> -> vector<32x32xf32>
    %17 = vector.broadcast %13 : vector<1x32xf32> to vector<32x32xf32>
    %18 = arith.addf %16, %17 : vector<32x32xf32>
    %cst_7 = arith.constant 0.000000e+00 : f32
    %19 = vector.broadcast %cst_7 : f32 to vector<32x32xf32>
    %20 = arith.maximumf %18, %19 : vector<32x32xf32>
    %cst_8 = arith.constant dense<0.000000e+00> : vector<32xf32>
    %21 = vector.multi_reduction <add>, %20, %cst_8 [0] : vector<32x32xf32> to vector<32xf32>
    %22 = vector.shape_cast %21 : vector<32xf32> to vector<1x32xf32>
    %cst_9 = arith.constant 3.200000e+01 : f32
    %23 = vector.broadcast %cst_9 : f32 to vector<1x32xf32>
    %24 = arith.divf %22, %23 : vector<1x32xf32>
    %25 = arith.mulf %20, %20 : vector<32x32xf32>
    %cst_10 = arith.constant dense<0.000000e+00> : vector<32xf32>
    %26 = vector.multi_reduction <add>, %25, %cst_10 [0] : vector<32x32xf32> to vector<32xf32>
    %27 = vector.shape_cast %26 : vector<32xf32> to vector<1x32xf32>
    %cst_11 = arith.constant 3.200000e+01 : f32
    %28 = vector.broadcast %cst_11 : f32 to vector<1x32xf32>
    %29 = arith.divf %27, %28 : vector<1x32xf32>
    %30 = arith.mulf %24, %24 : vector<1x32xf32>
    %31 = arith.subf %29, %30 : vector<1x32xf32>
    %cst_12 = arith.constant 9.99999974E-6 : f32
    %32 = vector.broadcast %cst_12 : f32 to vector<1x32xf32>
    %33 = arith.addf %31, %32 : vector<1x32xf32>
    %34 = math.rsqrt %33 : vector<1x32xf32>
    %35 = arith.mulf %14, %34 : vector<1x32xf32>
    %36 = arith.mulf %24, %35 : vector<1x32xf32>
    %37 = arith.subf %15, %36 : vector<1x32xf32>
    %38 = vector.broadcast %35 : vector<1x32xf32> to vector<32x32xf32>
    %39 = arith.mulf %20, %38 : vector<32x32xf32>
    %40 = vector.broadcast %37 : vector<1x32xf32> to vector<32x32xf32>
    %41 = arith.addf %39, %40 : vector<32x32xf32>
    %cst_13 = arith.constant 0xFF800000 : f32
    %42 = vector.broadcast %cst_13 : f32 to vector<34x32xf32>
    %c0_14 = arith.constant 0 : index
    %c0_15 = arith.constant 0 : index
    %43 = vector.load %arg7[%c0_14, %c0_15] : memref<34x32xf32, #tpu.memory_space<vmem>>, vector<34x32xf32>
    tpu.vector_store %arg7[%c0_14, %c0_15], %42 {strides = array<i32>} : memref<34x32xf32, #tpu.memory_space<vmem>>, vector<34x32xf32>,
    %44 = vector.extract_strided_slice %41 {offsets = [0, 0], sizes = [16, 32], strides = [1, 1]} : vector<32x32xf32> to vector<16x32xf32>
    %c1_16 = arith.constant 1 : index
    %c0_17 = arith.constant 0 : index
    %45 = vector.load %arg7[%c1_16, %c0_17] : memref<34x32xf32, #tpu.memory_space<vmem>>, vector<16x32xf32>
    tpu.vector_store %arg7[%c1_16, %c0_17], %44 {strides = array<i32>} : memref<34x32xf32, #tpu.memory_space<vmem>>, vector<16x32xf32>,
    %46 = vector.extract_strided_slice %41 {offsets = [16, 0], sizes = [16, 32], strides = [1, 1]} : vector<32x32xf32> to vector<16x32xf32>
    %c18 = arith.constant 18 : index
    %c0_18 = arith.constant 0 : index
    %47 = vector.load %arg7[%c18, %c0_18] : memref<34x32xf32, #tpu.memory_space<vmem>>, vector<16x32xf32>
    tpu.vector_store %arg7[%c18, %c0_18], %46 {strides = array<i32>} : memref<34x32xf32, #tpu.memory_space<vmem>>, vector<16x32xf32>,
    %c0_19 = arith.constant 0 : index
    %c0_20 = arith.constant 0 : index
    %48 = tpu.strided_load %arg7[%c0_19, %c0_20] {strides = array<i32: 2, 1>} : memref<34x32xf32, #tpu.memory_space<vmem>>, vector<8x32xf32>
    %c1_21 = arith.constant 1 : index
    %c0_22 = arith.constant 0 : index
    %49 = tpu.strided_load %arg7[%c1_21, %c0_22] {strides = array<i32: 2, 1>} : memref<34x32xf32, #tpu.memory_space<vmem>>, vector<8x32xf32>
    %c2_23 = arith.constant 2 : index
    %c0_24 = arith.constant 0 : index
    %50 = tpu.strided_load %arg7[%c2_23, %c0_24] {strides = array<i32: 2, 1>} : memref<34x32xf32, #tpu.memory_space<vmem>>, vector<8x32xf32>
    %51 = arith.maximumf %48, %49 : vector<8x32xf32>
    %52 = arith.maximumf %51, %50 : vector<8x32xf32>
    %c0_25 = arith.constant 0 : index
    %c0_26 = arith.constant 0 : index
    %53 = vector.load %arg5[%c0_25, %c0_26] : memref<16x32xf32, #tpu.memory_space<vmem>>, vector<8x32xf32>
    tpu.vector_store %arg5[%c0_25, %c0_26], %52 {strides = array<i32>} : memref<16x32xf32, #tpu.memory_space<vmem>>, vector<8x32xf32>,
    %c17 = arith.constant 17 : index
    %c0_27 = arith.constant 0 : index
    %54 = tpu.strided_load %arg7[%c17, %c0_27] {strides = array<i32: 2, 1>} : memref<34x32xf32, #tpu.memory_space<vmem>>, vector<8x32xf32>
    %c18_28 = arith.constant 18 : index
    %c0_29 = arith.constant 0 : index
    %55 = tpu.strided_load %arg7[%c18_28, %c0_29] {strides = array<i32: 2, 1>} : memref<34x32xf32, #tpu.memory_space<vmem>>, vector<8x32xf32>
    %c19 = arith.constant 19 : index
    %c0_30 = arith.constant 0 : index
    %56 = tpu.strided_load %arg7[%c19, %c0_30] {strides = array<i32: 2, 1>} : memref<34x32xf32, #tpu.memory_space<vmem>>, vector<8x32xf32>
    %57 = arith.maximumf %54, %55 : vector<8x32xf32>
    %58 = arith.maximumf %57, %56 : vector<8x32xf32>
    %c8 = arith.constant 8 : index
    %c0_31 = arith.constant 0 : index
    %59 = vector.load %arg5[%c8, %c0_31] : memref<16x32xf32, #tpu.memory_space<vmem>>, vector<8x32xf32>
    tpu.vector_store %arg5[%c8, %c0_31], %58 {strides = array<i32>} : memref<16x32xf32, #tpu.memory_space<vmem>>, vector<8x32xf32>,
    %cst_32 = arith.constant 0.000000e+00 : f32
    %60 = vector.broadcast %cst_32 : f32 to vector<1x32xf32>
    %61 = tpu.concatenate %60, %52, %60 in 0 : vector<1x32xf32>, vector<8x32xf32>, vector<1x32xf32> -> vector<10x32xf32>
    %62 = tpu.concatenate %60, %58, %60 in 0 : vector<1x32xf32>, vector<8x32xf32>, vector<1x32xf32> -> vector<10x32xf32>
    %63 = vector.extract_strided_slice %61 {offsets = [0, 0], sizes = [8, 32], strides = [1, 1]} : vector<10x32xf32> to vector<8x32xf32>
    %64 = vector.extract_strided_slice %61 {offsets = [1, 0], sizes = [8, 32], strides = [1, 1]} : vector<10x32xf32> to vector<8x32xf32>
    %65 = vector.extract_strided_slice %61 {offsets = [2, 0], sizes = [8, 32], strides = [1, 1]} : vector<10x32xf32> to vector<8x32xf32>
    %66 = tpu.concatenate %63, %64, %65 in 1 : vector<8x32xf32>, vector<8x32xf32>, vector<8x32xf32> -> vector<8x96xf32>
    %67 = vector.extract_strided_slice %62 {offsets = [0, 0], sizes = [8, 32], strides = [1, 1]} : vector<10x32xf32> to vector<8x32xf32>
    %68 = vector.extract_strided_slice %62 {offsets = [1, 0], sizes = [8, 32], strides = [1, 1]} : vector<10x32xf32> to vector<8x32xf32>
    %69 = vector.extract_strided_slice %62 {offsets = [2, 0], sizes = [8, 32], strides = [1, 1]} : vector<10x32xf32> to vector<8x32xf32>
    %70 = tpu.concatenate %67, %68, %69 in 1 : vector<8x32xf32>, vector<8x32xf32>, vector<8x32xf32> -> vector<8x96xf32>
    %71 = tpu.concatenate %66, %70 in 0 : vector<8x96xf32>, vector<8x96xf32> -> vector<16x96xf32>
    %c0_33 = arith.constant 0 : index
    %c0_34 = arith.constant 0 : index
    %72 = vector.load %arg3[%c0_33, %c0_34] : memref<96x64xf32, #tpu.memory_space<vmem>>, vector<96x64xf32>
    %c0_35 = arith.constant 0 : index
    %c0_36 = arith.constant 0 : index
    %73 = vector.load %arg4[%c0_35, %c0_36] : memref<3x64xf32, #tpu.memory_space<vmem>>, vector<1x64xf32>
    %c1_37 = arith.constant 1 : index
    %c0_38 = arith.constant 0 : index
    %74 = vector.load %arg4[%c1_37, %c0_38] : memref<3x64xf32, #tpu.memory_space<vmem>>, vector<1x64xf32>
    %c2_39 = arith.constant 2 : index
    %c0_40 = arith.constant 0 : index
    %75 = vector.load %arg4[%c2_39, %c0_40] : memref<3x64xf32, #tpu.memory_space<vmem>>, vector<1x64xf32>
    %cst_41 = arith.constant dense<0.000000e+00> : vector<16x64xf32>
    %76 = tpu.matmul %71, %72, %cst_41 {dimension_numbers = #tpu.dot_dimension_numbers<[1], [0], [0], [1], [0, 0, 1, 1], [], []>} : vector<16x96xf32>, vector<96x64xf32>, vector<16x64xf32> -> vector<16x64xf32>
    %77 = vector.broadcast %73 : vector<1x64xf32> to vector<16x64xf32>
    %78 = arith.addf %76, %77 : vector<16x64xf32>
    %cst_42 = arith.constant 0.000000e+00 : f32
    %79 = vector.broadcast %cst_42 : f32 to vector<16x64xf32>
    %80 = arith.maximumf %78, %79 : vector<16x64xf32>
    %cst_43 = arith.constant dense<0.000000e+00> : vector<64xf32>
    %81 = vector.multi_reduction <add>, %80, %cst_43 [0] : vector<16x64xf32> to vector<64xf32>
    %82 = vector.shape_cast %81 : vector<64xf32> to vector<1x64xf32>
    %cst_44 = arith.constant 1.600000e+01 : f32
    %83 = vector.broadcast %cst_44 : f32 to vector<1x64xf32>
    %84 = arith.divf %82, %83 : vector<1x64xf32>
    %85 = arith.mulf %80, %80 : vector<16x64xf32>
    %cst_45 = arith.constant dense<0.000000e+00> : vector<64xf32>
    %86 = vector.multi_reduction <add>, %85, %cst_45 [0] : vector<16x64xf32> to vector<64xf32>
    %87 = vector.shape_cast %86 : vector<64xf32> to vector<1x64xf32>
    %cst_46 = arith.constant 1.600000e+01 : f32
    %88 = vector.broadcast %cst_46 : f32 to vector<1x64xf32>
    %89 = arith.divf %87, %88 : vector<1x64xf32>
    %90 = arith.mulf %84, %84 : vector<1x64xf32>
    %91 = arith.subf %89, %90 : vector<1x64xf32>
    %cst_47 = arith.constant 9.99999974E-6 : f32
    %92 = vector.broadcast %cst_47 : f32 to vector<1x64xf32>
    %93 = arith.addf %91, %92 : vector<1x64xf32>
    %94 = math.rsqrt %93 : vector<1x64xf32>
    %95 = arith.mulf %74, %94 : vector<1x64xf32>
    %96 = arith.mulf %84, %95 : vector<1x64xf32>
    %97 = arith.subf %75, %96 : vector<1x64xf32>
    %98 = vector.broadcast %95 : vector<1x64xf32> to vector<16x64xf32>
    %99 = arith.mulf %80, %98 : vector<16x64xf32>
    %100 = vector.broadcast %97 : vector<1x64xf32> to vector<16x64xf32>
    %101 = arith.addf %99, %100 : vector<16x64xf32>
    %cst_48 = arith.constant 0xFF800000 : f32
    %102 = vector.broadcast %cst_48 : f32 to vector<18x64xf32>
    %c0_49 = arith.constant 0 : index
    %c0_50 = arith.constant 0 : index
    %103 = vector.load %arg8[%c0_49, %c0_50] : memref<18x64xf32, #tpu.memory_space<vmem>>, vector<18x64xf32>
    tpu.vector_store %arg8[%c0_49, %c0_50], %102 {strides = array<i32>} : memref<18x64xf32, #tpu.memory_space<vmem>>, vector<18x64xf32>,
    %104 = vector.extract_strided_slice %101 {offsets = [0, 0], sizes = [8, 64], strides = [1, 1]} : vector<16x64xf32> to vector<8x64xf32>
    %c1_51 = arith.constant 1 : index
    %c0_52 = arith.constant 0 : index
    %105 = vector.load %arg8[%c1_51, %c0_52] : memref<18x64xf32, #tpu.memory_space<vmem>>, vector<8x64xf32>
    tpu.vector_store %arg8[%c1_51, %c0_52], %104 {strides = array<i32>} : memref<18x64xf32, #tpu.memory_space<vmem>>, vector<8x64xf32>,
    %106 = vector.extract_strided_slice %101 {offsets = [8, 0], sizes = [8, 64], strides = [1, 1]} : vector<16x64xf32> to vector<8x64xf32>
    %c10 = arith.constant 10 : index
    %c0_53 = arith.constant 0 : index
    %107 = vector.load %arg8[%c10, %c0_53] : memref<18x64xf32, #tpu.memory_space<vmem>>, vector<8x64xf32>
    tpu.vector_store %arg8[%c10, %c0_53], %106 {strides = array<i32>} : memref<18x64xf32, #tpu.memory_space<vmem>>, vector<8x64xf32>,
    %c0_54 = arith.constant 0 : index
    %c0_55 = arith.constant 0 : index
    %108 = tpu.strided_load %arg8[%c0_54, %c0_55] {strides = array<i32: 2, 1>} : memref<18x64xf32, #tpu.memory_space<vmem>>, vector<4x64xf32>
    %c1_56 = arith.constant 1 : index
    %c0_57 = arith.constant 0 : index
    %109 = tpu.strided_load %arg8[%c1_56, %c0_57] {strides = array<i32: 2, 1>} : memref<18x64xf32, #tpu.memory_space<vmem>>, vector<4x64xf32>
    %c2_58 = arith.constant 2 : index
    %c0_59 = arith.constant 0 : index
    %110 = tpu.strided_load %arg8[%c2_58, %c0_59] {strides = array<i32: 2, 1>} : memref<18x64xf32, #tpu.memory_space<vmem>>, vector<4x64xf32>
    %111 = arith.maximumf %108, %109 : vector<4x64xf32>
    %112 = arith.maximumf %111, %110 : vector<4x64xf32>
    %c0_60 = arith.constant 0 : index
    %c0_61 = arith.constant 0 : index
    %113 = vector.load %arg6[%c0_60, %c0_61] : memref<8x64xf32, #tpu.memory_space<vmem>>, vector<4x64xf32>
    tpu.vector_store %arg6[%c0_60, %c0_61], %112 {strides = array<i32>} : memref<8x64xf32, #tpu.memory_space<vmem>>, vector<4x64xf32>,
    %c9 = arith.constant 9 : index
    %c0_62 = arith.constant 0 : index
    %114 = tpu.strided_load %arg8[%c9, %c0_62] {strides = array<i32: 2, 1>} : memref<18x64xf32, #tpu.memory_space<vmem>>, vector<4x64xf32>
    %c10_63 = arith.constant 10 : index
    %c0_64 = arith.constant 0 : index
    %115 = tpu.strided_load %arg8[%c10_63, %c0_64] {strides = array<i32: 2, 1>} : memref<18x64xf32, #tpu.memory_space<vmem>>, vector<4x64xf32>
    %c11 = arith.constant 11 : index
    %c0_65 = arith.constant 0 : index
    %116 = tpu.strided_load %arg8[%c11, %c0_65] {strides = array<i32: 2, 1>} : memref<18x64xf32, #tpu.memory_space<vmem>>, vector<4x64xf32>
    %117 = arith.maximumf %114, %115 : vector<4x64xf32>
    %118 = arith.maximumf %117, %116 : vector<4x64xf32>
    %c4 = arith.constant 4 : index
    %c0_66 = arith.constant 0 : index
    %119 = vector.load %arg6[%c4, %c0_66] : memref<8x64xf32, #tpu.memory_space<vmem>>, vector<4x64xf32>
    tpu.vector_store %arg6[%c4, %c0_66], %118 {strides = array<i32>} : memref<8x64xf32, #tpu.memory_space<vmem>>, vector<4x64xf32>,
    return
  }
}

</mosaic_0001>

<bundles_post_ra>
// kernel: tpu_custom_call.1
= control target key start
LH: loop header
LB: loop body
LE: loop exit
PB: predicated region body
PF: predicated region fallthrough
CT: control target
= control target key end

     0   :  { %12 = vsyncpa [#allocation5], 0  ;;  %vm44_vm0 = vcmask 1045504   ;;  %vm32_vm1 = vcmask 1046528   ;;  %s697_s9 = smov 64   ;;  %s698_s10 = smov 32   ;;  %s963_s0 = inlined_call_operand.vmem [shape: f32[36,32], index: 0, kind: input, shape index: {}]   ;;  %s964_s1 = inlined_call_operand.vmem [shape: f32[96,32], index: 1, kind: input, shape index: {}]   ;;  %s965_s2 = inlined_call_operand.vmem [shape: f32[3,32], index: 2, kind: input, shape index: {}]   ;;  %s966_s3 = inlined_call_operand.vmem [shape: f32[96,64], index: 3, kind: input, shape index: {}]   ;;  %s967_s4 = inlined_call_operand.vmem [shape: f32[3,64], index: 4, kind: input, shape index: {}]   ;;  %s968_s5 = inlined_call_operand.hbm [shape: f32[16,32], index: 5, kind: output, shape index: {0}]   ;;  %s969_s6 = inlined_call_operand.hbm [shape: f32[8,64], index: 6, kind: output, shape index: {1}]  }
   0x1   :  { %v742_v0 = vld [vmem:[%s963_s0] sm:$0xff]  ;;  %v747_v1 = vld [vmem:[%s963_s0 + $0x8] sm:$0xff]  ;;  %v756_v6 = vld [vmem:[%s963_s0 + $0x10] sm:$0xff] }
   0x2   :  { %v45_v2 = vrot.slane %v742_v0, 2  ;;  %v46_v3 = vrot.slane %v747_v1, 2  ;;  %v33_v4 = vrot.slane %v742_v0, 1  ;;  %v34_v5 = vrot.slane %v747_v1, 1  ;;  %v761_v7 = vld [vmem:[%s963_s0 + $0x18] sm:$0xff]  ;;  %v114_v14 = vld [vmem:[%s964_s1 + $0x50] sm:$0xff] }
   0x3   :  { %v36_v8 = vrot.slane %v756_v6, 1  ;;  %v64_v9 = vrot.slane %v761_v7, 1  ;;  %v768_v10 = vld [vmem:[%s963_s0 + $0x20] sm:$0xf]  ;;  %v115_v13 = vld [vmem:[%s964_s1 + $0x58] sm:$0xff]  ;;  %v48_v17 = vrot.slane %v756_v6, 2 }
   0x4   :  { %v47_v11 = vsel %vm44_vm0, %v45_v2, %v46_v3  ;;  %v35_v12 = vsel %vm32_vm1, %v33_v4, %v34_v5  ;;  %v66_v18 = vrot.slane %v768_v10, 1  ;;  %585 = vmatprep.subr.mxu0 %v115_v13  ;;  %v113_v19 = vld [vmem:[%s964_s1 + $0x48] sm:$0xff] }
   0x5   :  { %50 = vrot.lane.b32.xlu1 %v47_v11, %s697_s9  ;;  %38 = vrot.lane.b32.xlu0 %v35_v12, %s698_s10  ;;  %v65_v15 = vsel %vm32_vm1, %v36_v8, %v64_v9  ;;  %v37_v16 = vsel %vm32_vm1, %v34_v5, %v36_v8 }
   0x6   :  { %586 = vmatpush3.msra.mxu0 %v115_v13 }
   0x7   :  { %587 = vmatprep.subr.mxu0 %v114_v14 }
   0x8   :  { %13 = vsyncpa [#allocation7], 0  ;;  %v49_v20 = vsel %vm44_vm0, %v46_v3, %v48_v17  ;;  %v67_v21 = vsel %vm32_vm1, %v64_v9, %v66_v18  ;;  %v77_v22 = vrot.slane %v761_v7, 2  ;;  %588 = vmatpush3.msra.mxu0 %v114_v14  ;;  %v112_v23 = vld [vmem:[%s964_s1 + $0x40] sm:$0xff]  ;;  %v111_v24 = vld [vmem:[%s964_s1 + $0x38] sm:$0xff]  ;;  %v79_v26 = vrot.slane %v768_v10, 2 }
   0x9   :  { %68 = vrot.lane.b32.xlu1 %v65_v15, %s698_s10  ;;  %40 = vrot.lane.b32.xlu0 %v37_v16, %s698_s10  ;;  %v110_v27 = vld [vmem:[%s964_s1 + $0x30] sm:$0xff]  ;;  %v109_v29 = vld [vmem:[%s964_s1 + $0x28] sm:$0xff]  ;;  %vm56_vm2 = vcmask 261120   ;;  %vm59_vm3 = vcmask 523264   ;;  %vm123_vm4 = vcmask 785408   ;;  %vm283_vm5 = vcmask 254976  }
   0xa   :  { %589 = vmatprep.subr.mxu0 %v113_v19  ;;  %v78_v25 = vsel %vm44_vm0, %v48_v17, %v77_v22  ;;  %v80_v28 = vsel %vm44_vm0, %v77_v22, %v79_v26  ;;  %v108_v30 = vld [vmem:[%s964_s1 + $0x20] sm:$0xff]  ;;  %v107_v31 = vld [vmem:[%s964_s1 + $0x18] sm:$0xff]  ;;  %v106_v32 = vld [vmem:[%s964_s1 + $0x10] sm:$0xff]  ;;  %v699_v60 = vmov -inf   ;;  %vm309_vm6 = vcmask 1040384  }
   0xb   :  { %590 = vmatpush3.msra.mxu0 %v113_v19  ;;  %v105_v33 = vld [vmem:[%s964_s1 + $0x8] sm:$0xff]  ;;  %v104_v34 = vld [vmem:[%s964_s1] sm:$0xff]  ;;  %279 = vst.msk [vmem:[#allocation2] sm:$0xff] %vm56_vm2, %v699_v60  ;;  %280 = vst.msk [vmem:[#allocation2 + $0x8] sm:$0xff] %vm56_vm2, %v699_v60  ;;  %vm495_vm7 = vcmask 517120  }
   0xc   :  { %591 = vmatprep.subr.mxu0 %v112_v23  ;;  %281 = vst.msk [vmem:[#allocation2 + $0x10] sm:$0xff] %vm56_vm2, %v699_v60  ;;  %282 = vst.msk [vmem:[#allocation2 + $0x18] sm:$0xff] %vm56_vm2, %v699_v60  ;;  %v360_v61 = vld [vmem:[%s966_s3 + $0x58] sm:$0xff]  ;;  %v359_v62 = vld [vmem:[%s966_s3 + $0x50] sm:$0xff] }
   0xd   :  { %52 = vrot.lane.b32.xlu1 %v49_v20, %s697_s9  ;;  %70 = vrot.lane.b32.xlu0 %v67_v21, %s698_s10  ;;  %284 = vst.msk [vmem:[#allocation2 + $0x20] sm:$0x3] %vm283_vm5, %v699_v60  ;;  %v358_v63 = vld [vmem:[%s966_s3 + $0x48] sm:$0xff]  ;;  %v355_v2 = vld [vmem:[%s966_s3 + $0x30] sm:$0xff] }
   0xe   :  { %592 = vmatpush3.msra.mxu0 %v112_v23  ;;  %493 = vst.msk [vmem:[#allocation3] sm:$0xff] %vm59_vm3, %v699_v60  ;;  %494 = vst.msk [vmem:[#allocation3 + $0x8] sm:$0xff] %vm59_vm3, %v699_v60  ;;  %615 = vmatprep.subr.mxu1 %v360_v61  ;;  %v354_v3 = vld [vmem:[%s966_s3 + $0x28] sm:$0xff]  ;;  %v353_v4 = vld [vmem:[%s966_s3 + $0x20] sm:$0xff] }
   0xf   :  { %593 = vmatprep.subr.mxu0 %v111_v24  ;;  %616 = vmatpush3.msra.mxu1 %v360_v61  ;;  %v352_v5 = vld [vmem:[%s966_s3 + $0x18] sm:$0xff]  ;;  %v547_v8 = vld [vmem:[%s965_s2] ss:$0 sm:$0xff]  ;;  %v118_v61 = vld [vmem:[%s965_s2 + $0x2] sm:$0x1] }
  0x10   :  { %594 = vmatpush3.msra.mxu0 %v111_v24  ;;  %617 = vmatprep.subr.mxu1 %v359_v62  ;;  %496 = vst.msk [vmem:[#allocation3 + $0x10] sm:$0x3] %vm495_vm7, %v699_v60 }
  0x11   :  { %81 = vrot.lane.b32.xlu1 %v78_v25, %s697_s9  ;;  %72 = vrot.lane.b32.xlu0 %v66_v18, %s698_s10 }
  0x12   :  { %595 = vmatprep.subr.mxu0 %v110_v27  ;;  %618 = vmatpush3.msra.mxu1 %v359_v62 }
  0x13   :  { %596 = vmatpush3.msra.mxu0 %v110_v27  ;;  %619 = vmatprep.subr.mxu1 %v358_v63 }
  0x14   :  { %597 = vmatprep.subr.mxu0 %v109_v29  ;;  %620 = vmatpush3.msra.mxu1 %v358_v63 }
  0x15   :  { %85 = vrot.lane.b32.xlu1 %v79_v26, %s697_s9  ;;  %83 = vrot.lane.b32.xlu0 %v80_v28, %s697_s9 }
  0x16   :  { %598 = vmatpush3.msra.mxu0 %v109_v29 }
  0x17   :  { %599 = vmatprep.subr.mxu0 %v108_v30 }
  0x18   :  { %600 = vmatpush3.msra.mxu0 %v108_v30 }
  0x19   :  { %601 = vmatprep.subr.mxu0 %v107_v31 }
  0x1a   :  { %602 = vmatpush3.msra.mxu0 %v107_v31 }
  0x1b   :  { %603 = vmatprep.subr.mxu0 %v106_v32 }
  0x1c   :  { %604 = vmatpush3.msra.mxu0 %v106_v32 }
  0x1d   :  { %605 = vmatprep.subr.mxu0 %v105_v33 }
  0x1e   :  { %606 = vmatpush3.msra.mxu0 %v105_v33 }
  0x1f   :  { %607 = vmatprep.subr.mxu0 %v104_v34 }
  0x20   :  { %608 = vmatpush3.msra.mxu0 %v104_v34 }
  0x77   :  { %v51_v35 = vpop.permute.xlu1 %50  ;;  %v39_v36 = vpop.permute.xlu0 %38 }
  0x78   :  { %v57_v37 = vsel %vm56_vm2, %v742_v0, %v39_v36  ;;  %v357_v0 = vld [vmem:[%s966_s3 + $0x40] sm:$0xff] }
  0x79   :  { %v60_v38 = vsel %vm59_vm3, %v57_v37, %v51_v35  ;;  %621 = vmatprep.subr.mxu1 %v357_v0 }
  0x7a   :  { %609 = vmatprep.mubr.msk.f32.mxu0 %vm123_vm4, %v60_v38  ;;  %622 = vmatpush3.msra.mxu1 %v357_v0 }
  0x7b   :  { %v69_v39 = vpop.permute.xlu1 %68  ;;  %v41_v40 = vpop.permute.xlu0 %40 }
  0x7c   :  { %v58_v41 = vsel %vm56_vm2, %v747_v1, %v41_v40  ;;  %v90_v47 = vsel %vm56_vm2, %v756_v6, %v69_v39  ;;  %v356_v1 = vld [vmem:[%s966_s3 + $0x38] sm:$0xff] }
  0x7d   :  { %623 = vmatprep.subr.mxu1 %v356_v1 }
  0x7e   :  { %624 = vmatpush3.msra.mxu1 %v356_v1 }
  0x7f   :  { %v53_v42 = vpop.permute.xlu1 %52  ;;  %v71_v43 = vpop.permute.xlu0 %70  ;;  %625 = vmatprep.subr.mxu1 %v355_v2 }
  0x80   :  { %v61_v44 = vsel %vm59_vm3, %v58_v41, %v53_v42  ;;  %v91_v49 = vsel %vm56_vm2, %v761_v7, %v71_v43  ;;  %626 = vmatpush3.msra.mxu1 %v355_v2 }
  0x81   :  { %610 = vmatmul.mubr.msk.f32.vlgmr.msra.gmra.mxu0 %vm123_vm4, %v61_v44  ;;  %627 = vmatprep.subr.mxu1 %v354_v3 }
  0x82   :  { %628 = vmatpush3.msra.mxu1 %v354_v3 }
  0x83   :  { %v82_v45 = vpop.permute.xlu1 %81  ;;  %v73_v46 = vpop.permute.xlu0 %72  ;;  %629 = vmatprep.subr.mxu1 %v353_v4 }
  0x84   :  { %v93_v48 = vsel %vm59_vm3, %v90_v47, %v82_v45  ;;  %v92_v50 = vsel %vm56_vm2, %v768_v10, %v73_v46  ;;  %630 = vmatpush3.msra.mxu1 %v353_v4 }
  0x85   :  { %v99_v55 = vrot.slane %v93_v48, 2  ;;  %631 = vmatprep.subr.mxu1 %v352_v5 }
  0x86   :  { %632 = vmatpush3.msra.mxu1 %v352_v5 }
  0x87   :  { %v86_v51 = vpop.permute.xlu1 %85  ;;  %v84_v52 = vpop.permute.xlu0 %83 }
  0x88   :  { %v95_v53 = vsel %vm59_vm3, %v92_v50, %v86_v51  ;;  %v94_v54 = vsel %vm59_vm3, %v91_v49, %v84_v52 }
  0x89   :  { %v102_v56 = vrot.slane %v95_v53, 2  ;;  %v100_v57 = vrot.slane %v94_v54, 2  ;;  %v263_v54 = vlaneseq }
  0x8b   :  { %v101_v58 = vsel %vm44_vm0, %v99_v55, %v100_v57  ;;  %v103_v59 = vsel %vm44_vm0, %v100_v57, %v102_v56  ;;  %v264_v55 = vshrl.u32 %v263_v54, 7  ;;  %v117_v56 = vld [vmem:[%s965_s2 + $0x1] sm:$0x1] }
  0x8c   :  { %612 = vmatprep.mubr.msk.f32.mxu0 %vm123_vm4, %v101_v58 }
  0x8d   :  { %613 = vmatmul.mubr.msk.f32.gmra.mxu0 %vm123_vm4, %v103_v59  ;;  %v903_v57 = vsub.s32 0, %v264_v55 }
 0x141   :  { %v611_v6 = vpop.f32.mrf.mxu0 }
 0x142   :  { %v206_v10 = vadd.f32 %v611_v6, %v547_v8 }
 0x143   :  { %v200_v7 = vpop.f32.mrf.mxu0 }
 0x144   :  { %v201_v9 = vadd.f32 %v547_v8, %v200_v7  ;;  %v220_v12 = vmax.f32 %v206_v10, 0.0  ;;  %v351_v10 = vld [vmem:[%s966_s3 + $0x10] sm:$0xff] }
 0x145   :  { %633 = vmatprep.subr.mxu1 %v351_v10 }
 0x146   :  { %v219_v11 = vmax.f32 %v201_v9, 0.0  ;;  %v239_v17 = vmul.f32 %v220_v12, %v220_v12  ;;  %v224_v21 = vsel %vm56_vm2, %v220_v12, 0.0  ;;  %634 = vmatpush3.msra.mxu1 %v351_v10 }
 0x148   :  { %v238_v14 = vmul.f32 %v219_v11, %v219_v11  ;;  %v223_v18 = vsel %vm56_vm2, %v219_v11, 0.0  ;;  %v243_v25 = vsel %vm56_vm2, %v239_v17, 0.0 }
 0x149   :  { %v225_v24 = vadd.f32 %v224_v21, %v223_v18 }
 0x14a   :  { %v242_v22 = vsel %vm56_vm2, %v238_v14, 0.0 }
 0x14b   :  { %v244_v29 = vadd.f32 %v243_v25, %v242_v22 }
 0x14d   :  { %v614_v13 = vpop.f32.mrf.mxu0 }
 0x14e   :  { %v216_v15 = vadd.f32 %v614_v13, %v547_v8 }
 0x14f   :  { %v210_v16 = vpop.f32.mrf.mxu0 }
 0x150   :  { %v222_v19 = vmax.f32 %v216_v15, 0.0  ;;  %v211_v20 = vadd.f32 %v547_v8, %v210_v16 }
 0x152   :  { %v221_v23 = vmax.f32 %v211_v20, 0.0  ;;  %v241_v26 = vmul.f32 %v222_v19, %v222_v19  ;;  %v228_v31 = vsel %vm56_vm2, %v222_v19, 0.0 }
 0x154   :  { %v226_v27 = vsel %vm56_vm2, %v221_v23, 0.0  ;;  %v240_v28 = vmul.f32 %v221_v23, %v221_v23  ;;  %v247_v35 = vsel %vm56_vm2, %v241_v26, 0.0 }
 0x155   :  { %v227_v30 = vadd.f32 %v226_v27, %v225_v24 }
 0x156   :  { %v245_v32 = vsel %vm56_vm2, %v240_v28, 0.0 }
 0x157   :  { %v229_v33 = vadd.f32 %v228_v31, %v227_v30  ;;  %v246_v34 = vadd.f32 %v245_v32, %v244_v29 }
 0x159   :  { %v230_v36 = vrot.slane %v229_v33, 4  ;;  %v248_v37 = vadd.f32 %v247_v35, %v246_v34 }
 0x15b   :  { %v231_v38 = vadd.f32 %v230_v36, %v229_v33  ;;  %v249_v39 = vrot.slane %v248_v37, 4 }
 0x15d   :  { %v232_v40 = vrot.slane %v231_v38, 2  ;;  %v250_v41 = vadd.f32 %v249_v39, %v248_v37 }
 0x15f   :  { %v233_v42 = vadd.f32 %v232_v40, %v231_v38  ;;  %v251_v43 = vrot.slane %v250_v41, 2 }
 0x161   :  { %v234_v44 = vrot.slane %v233_v42, 1  ;;  %v252_v45 = vadd.f32 %v251_v43, %v250_v41 }
 0x163   :  { %v235_v46 = vadd.f32 %v234_v44, %v233_v42  ;;  %v253_v47 = vrot.slane %v252_v45, 1 }
 0x165   :  { %v237_v48 = vmul.f32 0.03125, %v235_v46  ;;  %v254_v49 = vadd.f32 %v253_v47, %v252_v45 }
 0x167   :  { %v255_v50 = vmul.f32 0.03125, %v254_v49  ;;  %v256_v51 = vmul.f32 %v237_v48, %v237_v48 }
 0x169   :  { %v257_v52 = vsub.f32 %v255_v50, %v256_v51 }
 0x16b   :  { %v258_v53 = vadd.f32 1e-05, %v257_v52 }
 0x16d   :  { %649 = vrsqrt.f32 %v258_v53 }
 0x17a   :  { %v650_v58 = vpop.eup %649 }
 0x17b   :  { %v260_v59 = vmul.f32 %v650_v58, %v117_v56 }
 0x17d   :  { %v261_v62 = vmul.f32 %v260_v59, %v237_v48  ;;  %v266_v63 = vrot.slane %v260_v59, %v903_v57 }
 0x17f   :  { %v262_v0 = vsub.f32 %v118_v61, %v261_v62  ;;  %v267_v1 = vmul.f32 %v266_v63, %v219_v11  ;;  %v268_v2 = vmul.f32 %v266_v63, %v220_v12  ;;  %v269_v3 = vmul.f32 %v266_v63, %v221_v23  ;;  %v350_v11 = vld [vmem:[%s966_s3 + $0x8] sm:$0xff] }
 0x180   :  { %v270_v4 = vmul.f32 %v266_v63, %v222_v19  ;;  %635 = vmatprep.subr.mxu1 %v350_v11  ;;  %v349_v19 = vld [vmem:[%s966_s3] sm:$0xff]  ;;  %s700_s3 = smov [#allocation4]  }
 0x181   :  { %v274_v5 = vrot.slane %v262_v0, %v903_v57  ;;  %636 = vmatpush3.msra.mxu1 %v350_v11 }
 0x182   :  { %637 = vmatprep.subr.mxu1 %v349_v19 }
 0x183   :  { %v275_v6 = vadd.f32 %v274_v5, %v267_v1  ;;  %v276_v7 = vadd.f32 %v274_v5, %v268_v2  ;;  %v277_v8 = vadd.f32 %v274_v5, %v269_v3  ;;  %v278_v9 = vadd.f32 %v274_v5, %v270_v4  ;;  %638 = vmatpush3.msra.mxu1 %v349_v19 }
 0x185   :  { %285 = vst.msk [vmem:[#allocation2 + $0x1] sm:$0xff] %vm56_vm2, %v275_v6  ;;  %286 = vst.msk [vmem:[#allocation2 + $0x9] sm:$0xff] %vm56_vm2, %v276_v7 }
 0x186   :  { %287 = vst.msk [vmem:[#allocation2 + $0x12] sm:$0xff] %vm56_vm2, %v277_v8  ;;  %288 = vst.msk [vmem:[#allocation2 + $0x1a] sm:$0xff] %vm56_vm2, %v278_v9 }
 0x18c   :  { %v289_v12 = vld [vmem:[#allocation2] ss:$2 sm:$0xff]  ;;  %v291_v13 = vld [vmem:[#allocation2 + $0x1] ss:$2 sm:$0xff] }
 0x18d   :  { %v294_v14 = vmax.f32 %v289_v12, %v291_v13  ;;  %v298_v15 = vld [vmem:[#allocation2 + $0x11] ss:$2 sm:$0xff]  ;;  %v300_v16 = vld [vmem:[#allocation2 + $0x12] ss:$2 sm:$0xff]  ;;  %v293_v17 = vld [vmem:[#allocation2 + $0x2] ss:$2 sm:$0xff] }
 0x18e   :  { %v303_v18 = vmax.f32 %v298_v15, %v300_v16  ;;  %v302_v21 = vld [vmem:[#allocation2 + $0x13] ss:$2 sm:$0xff] }
 0x18f   :  { %v295_v20 = vmax.f32 %v294_v14, %v293_v17 }
 0x190   :  { %v304_v22 = vmax.f32 %v303_v18, %v302_v21 }
 0x191   :  { %v307_v23 = vrot.slane %v295_v20, 7  ;;  %296 = vst.msk [vmem:[#allocation4] sm:$0xff] %vm56_vm2, %v295_v20 }
 0x192   :  { %v313_v24 = vrot.slane %v304_v22, 7  ;;  %305 = vst.msk [vmem:[#allocation4 + $0x8] sm:$0xff] %vm56_vm2, %v304_v22 }
 0x193   :  { %v310_v25 = vsel %vm309_vm6, 0.0, %v307_v23  ;;  %v311_v26 = vsel %vm309_vm6, %v307_v23, 0.0 }
 0x194   :  { %v325_v27 = vrot.slane %v310_v25, 2  ;;  %v326_v28 = vrot.slane %v311_v26, 2  ;;  %v319_v29 = vrot.slane %v310_v25, 1  ;;  %v320_v30 = vrot.slane %v311_v26, 1 }
 0x195   :  { %v315_v31 = vsel %vm309_vm6, 0.0, %v313_v24  ;;  %v316_v32 = vsel %vm309_vm6, %v313_v24, 0.0 }
 0x196   :  { %v327_v33 = vsel %vm44_vm0, %v325_v27, %v326_v28  ;;  %v321_v34 = vsel %vm32_vm1, %v319_v29, %v320_v30  ;;  %v341_v35 = vrot.slane %v315_v31, 2  ;;  %v342_v36 = vrot.slane %v316_v32, 2 }
 0x197   :  { %328 = vrot.lane.b32.xlu1 %v327_v33, %s697_s9  ;;  %322 = vrot.lane.b32.xlu0 %v321_v34, %s698_s10  ;;  %v335_v37 = vrot.slane %v315_v31, 1  ;;  %v336_v38 = vrot.slane %v316_v32, 1 }
 0x198   :  { %v343_v39 = vsel %vm44_vm0, %v341_v35, %v342_v36 }
 0x199   :  { %v337_v40 = vsel %vm32_vm1, %v335_v37, %v336_v38 }
 0x19b   :  { %344 = vrot.lane.b32.xlu1 %v343_v39, %s697_s9  ;;  %338 = vrot.lane.b32.xlu0 %v337_v40, %s698_s10  ;;  %s522_s9 = sshll.u32 %s700_s3, 4  ;;  %s523_s9 = int_to_ptr.vmem [resolvable:$true] %s522_s9 }
 0x19c   :  { %s653_s10 = scalar_lea.vmem %s523_s9, 256  ;;  %p658_p1 = scmp.lt.s32.totalorder %s523_s9, %s523_s9 }
 0x19d   :  { %p654_p0 = scmp.ne.s32.totalorder %s523_s9, %s653_s10  ;;  %p659_p2 = scmp.lt.s32.totalorder %s653_s10, %s653_s10 }
 0x19f   :  { %p660_p3 = por %p659_p2, %p658_p1 }
 0x1a1   :  { %p661_p4 = pnand %p660_p3, %p654_p0 }
 0x209   :  { %v329_v41 = vpop.permute.xlu1 %328  ;;  %v323_v42 = vpop.permute.xlu0 %322 }
 0x20a   :  { %v331_v43 = vsel %vm56_vm2, %v310_v25, %v323_v42 }
 0x20b   :  { %v332_v44 = vsel %vm59_vm3, %v331_v43, %v329_v41 }
 0x20c   :  { %639 = vmatprep.mubr.msk.f32.mxu1 %vm123_vm4, %v332_v44 }
 0x20d   :  { %v345_v45 = vpop.permute.xlu1 %344  ;;  %v339_v46 = vpop.permute.xlu0 %338 }
 0x20e   :  { %v347_v47 = vsel %vm56_vm2, %v315_v31, %v339_v46 }
 0x20f   :  { %v348_v48 = vsel %vm59_vm3, %v347_v47, %v345_v45 }
 0x210   :  { %640 = vmatmul.mubr.msk.f32.vlgmr.msra.gmra.mxu1 %vm123_vm4, %v348_v48 }
 0x211   :  { %664 = shalt.err (!%p661_p4)
}
 0x212   :  { %s701_s13 = smov 128   ;;  %s702_s14 = smov 8   ;;  %v552_v60 = vld [vmem:[%s967_s4] ss:$0 sm:$0xff]  ;;  %v362_v18 = vld [vmem:[%s967_s4 + $0x1] sm:$0x1] }
 0x213   :  { %528 = dma.vmem_to_hbm [thread:$0]  %s523_s9, 256, %s968_s5, [#allocation5], %s701_s13, %s701_s13, %s702_s14   ;;  %vm506_vm8 = vcmask 519168  }
 0x214   :  { %v363_v21 = vld [vmem:[%s967_s4 + $0x2] sm:$0x1]  ;;  %s703_s4 = smov [#allocation6]  }
 0x215   :  { %s535_s22 = sshll.u32 %s703_s4, 4  ;;  %s536_s22 = int_to_ptr.vmem [resolvable:$true] %s535_s22 }
 0x216   :  { %s673_s23 = scalar_lea.vmem %s536_s22, 128  ;;  %p678_p6 = scmp.lt.s32.totalorder %s536_s22, %s536_s22 }
 0x217   :  { %p674_p5 = scmp.ne.s32.totalorder %s536_s22, %s673_s23  ;;  %p679_p7 = scmp.lt.s32.totalorder %s673_s23, %s673_s23 }
 0x219   :  { %p680_p8 = por %p679_p7, %p678_p6 }
 0x21b   :  { %p681_p9 = pnand %p680_p8, %p674_p5 }
 0x2d0   :  { %v641_v49 = vpop.f32.mrf.mxu1 }
 0x2d1   :  { %v446_v50 = vadd.f32 %v641_v49, %v552_v60 }
 0x2d2   :  { %v440_v51 = vpop.f32.mrf.mxu1 }
 0x2d3   :  { %v450_v52 = vmax.f32 %v446_v50, 0.0  ;;  %v441_v53 = vadd.f32 %v552_v60, %v440_v51 }
 0x2d5   :  { %v463_v54 = vmul.f32 %v450_v52, %v450_v52  ;;  %v449_v55 = vmax.f32 %v441_v53, 0.0  ;;  %v452_v56 = vsel %vm59_vm3, %v450_v52, 0.0 }
 0x2d7   :  { %v451_v58 = vsel %vm59_vm3, %v449_v55, 0.0  ;;  %v462_v59 = vmul.f32 %v449_v55, %v449_v55  ;;  %v465_v62 = vsel %vm59_vm3, %v463_v54, 0.0 }
 0x2d8   :  { %v453_v61 = vadd.f32 %v452_v56, %v451_v58 }
 0x2d9   :  { %v464_v63 = vsel %vm59_vm3, %v462_v59, 0.0 }
 0x2da   :  { %v454_v0 = vrot.slane %v453_v61, 4  ;;  %v466_v1 = vadd.f32 %v465_v62, %v464_v63 }
 0x2dc   :  { %v455_v2 = vadd.f32 %v454_v0, %v453_v61  ;;  %v467_v3 = vrot.slane %v466_v1, 4 }
 0x2de   :  { %v456_v4 = vrot.slane %v455_v2, 2  ;;  %v468_v5 = vadd.f32 %v467_v3, %v466_v1 }
 0x2e0   :  { %v457_v6 = vadd.f32 %v456_v4, %v455_v2  ;;  %v469_v7 = vrot.slane %v468_v5, 2 }
 0x2e2   :  { %v458_v8 = vrot.slane %v457_v6, 1  ;;  %v470_v9 = vadd.f32 %v469_v7, %v468_v5 }
 0x2e4   :  { %v459_v10 = vadd.f32 %v458_v8, %v457_v6  ;;  %v471_v11 = vrot.slane %v470_v9, 1 }
 0x2e6   :  { %v461_v12 = vmul.f32 0.0625, %v459_v10  ;;  %v472_v13 = vadd.f32 %v471_v11, %v470_v9 }
 0x2e8   :  { %v473_v14 = vmul.f32 0.0625, %v472_v13  ;;  %v474_v15 = vmul.f32 %v461_v12, %v461_v12 }
 0x2ea   :  { %v475_v16 = vsub.f32 %v473_v14, %v474_v15 }
 0x2ec   :  { %v476_v17 = vadd.f32 1e-05, %v475_v16 }
 0x2ee   :  { %651 = vrsqrt.f32 %v476_v17 }
 0x2fb   :  { %v652_v19 = vpop.eup %651 }
 0x2fc   :  { %v478_v20 = vmul.f32 %v652_v19, %v362_v18 }
 0x2fe   :  { %v479_v22 = vmul.f32 %v478_v20, %v461_v12  ;;  %v484_v23 = vrot.slane %v478_v20, %v903_v57 }
 0x300   :  { %v480_v24 = vsub.f32 %v363_v21, %v479_v22  ;;  %v485_v25 = vmul.f32 %v484_v23, %v449_v55  ;;  %v486_v26 = vmul.f32 %v484_v23, %v450_v52 }
 0x302   :  { %v490_v27 = vrot.slane %v480_v24, %v903_v57 }
 0x304   :  { %v491_v28 = vadd.f32 %v490_v27, %v485_v25  ;;  %v492_v29 = vadd.f32 %v490_v27, %v486_v26 }
 0x306   :  { %497 = vst.msk [vmem:[#allocation3 + $0x1] sm:$0xff] %vm59_vm3, %v491_v28  ;;  %498 = vst.msk [vmem:[#allocation3 + $0xa] sm:$0xff] %vm59_vm3, %v492_v29 }
 0x30d   :  { %v499_v30 = vld [vmem:[#allocation3] ss:$2 sm:$0xf]  ;;  %v501_v31 = vld [vmem:[#allocation3 + $0x1] ss:$2 sm:$0xf] }
 0x30e   :  { %v504_v32 = vmax.f32 %v499_v30, %v501_v31  ;;  %v509_v33 = vld [vmem:[#allocation3 + $0x9] ss:$2 sm:$0xf]  ;;  %v503_v34 = vld [vmem:[#allocation3 + $0x2] ss:$2 sm:$0xf] }
 0x30f   :  { %v511_v35 = vld [vmem:[#allocation3 + $0xa] ss:$2 sm:$0xf]  ;;  %v513_v38 = vld [vmem:[#allocation3 + $0xb] ss:$2 sm:$0xf] }
 0x310   :  { %v505_v36 = vmax.f32 %v504_v32, %v503_v34  ;;  %v514_v37 = vmax.f32 %v509_v33, %v511_v35 }
 0x312   :  { %507 = vst.msk [vmem:[#allocation6] sm:$0xf] %vm506_vm8, %v505_v36  ;;  %v515_v57 = vmax.f32 %v514_v37, %v513_v38 }
 0x314   :  { %516 = vst.msk [vmem:[#allocation6 + $0x4] sm:$0xf] %vm506_vm8, %v515_v57 }
 0x315   :  { %684 = shalt.err (!%p681_p9)
}
 0x316   :  { %538 = dma.vmem_to_hbm [thread:$0]  %s536_s22, 128, %s969_s6, [#allocation7]  }
 0x317   :  { %693 = dma.done.wait [#allocation5], 256  }
 0x318   :  { %694 = vsyncadd [#allocation5], 4294967040 }
 0x319   :  { %695 = dma.done.wait [#allocation7], 128  }
 0x31a   :  { %696 = vsyncadd [#allocation7], 4294967168 }
 0x31b   :  { %545 = vsyncpa [#allocation5], 1 }
 0x31c   :  { %546 = vsyncpa [#allocation7], 1 }

</bundles_post_ra>
